<compile_context>
chip_gen: v7x
topology: tpu7x:2x2x1
jax: 0.10.0
libtpu: 0.0.40
codegen_flags: <defaults>
</compile_context>

<pallas_src>
import jax
import jax.numpy as jnp
from jax.experimental import pallas as pl
from jax.experimental.pallas import tpu as pltpu


def _linear_kernel(x_ref, w_ref, b_ref, o_ref):
    # x_ref: (TB, D) native dtype VMEM (streamed), w_ref: (1, D) VMEM (resident),
    # b_ref: (1,) f32 SMEM, o_ref: (1, TB) f32 VMEM (lane-dense output row).
    x = x_ref[...].astype(jnp.float32)                 # per-tile upcast (VPU)
    w = w_ref[...].astype(jnp.float32)                 # (1, D), broadcasts over rows
    acc = jnp.sum(x * w, axis=-1, keepdims=True)       # (TB, 1) f32, XLU reduce
    # Sublane->lane transpose on the XLU (MXU/extended slot idle here), then
    # one unmasked lane-dense store per tile.
    o_ref[...] = jnp.transpose(acc, (1, 0)) + b_ref[0]


def _vmem_capacity_bytes():
    """Physical VMEM of the local TPU generation; conservative fallback (v7x)."""
    try:
        return int(pltpu.get_tpu_info().vmem_capacity_bytes)
    except Exception:
        return 64 * 1024 * 1024


def _pick_batch_tile(batch, d_pad, itemsize, vmem_cap):
    """Batch tile: ~1/8 of physical VMEM per streamed x buffer (double-buffered
    -> ~1/4), multiple of 128 rows so the lane-dense output blocks are legal and
    all packed-sublane multiples (8/16/32) are satisfied."""
    budget = vmem_cap // 8                      # 16 MiB on v5e/v6e, 8 MiB on v7x
    tb = budget // max(1, d_pad * itemsize)
    tb = min((tb // 128) * 128, 4096)
    if tb < 128 or batch <= 128:
        return batch                            # single full-extent step (always legal)
    if batch <= tb:
        # Split into >= 2 steps so ("parallel",) can shard over v7x's 2 TCs.
        tb = max(128, (-(-((batch + 1) // 2) // 128)) * 128)
    return tb


def _vmem_limit_bytes(tb, d_pad, x_itemsize, vmem_cap):
    x_bytes = 2 * tb * d_pad * x_itemsize       # double-buffered streamed x tiles
    w_bytes = 2 * 8 * d_pad * 4                 # resident (sublane-padded) weight
    o_bytes = 2 * 8 * tb * 4                    # (1, TB) f32 out blocks
    need = x_bytes + w_bytes + o_bytes + 4 * 1024 * 1024
    limit = max(need, 32 * 1024 * 1024)
    return int(min(limit, max((vmem_cap * 3) // 4, need)))


def simple_classifier_forward(x, weight, bias, *, tile_batch=None):
    """Forward pass of SimpleClassifier (nn.Linear(input_dim, 1)).

    x:      (batch, input_dim) f32 / bf16 (streamed at native width)
    weight: (1, input_dim) or (input_dim,)   (PyTorch layout: out x in)
    bias:   (1,) or scalar
    returns (batch, 1) float32
    """
    batch, input_dim = x.shape
    x_itemsize = jnp.dtype(x.dtype).itemsize
    d_pad = (-(-input_dim // 128)) * 128        # lane-padded feature width in VMEM
    vmem_cap = _vmem_capacity_bytes()

    if tile_batch is not None:
        tile_batch = int(tile_batch)
        if tile_batch >= batch or batch <= 128:
            tb = batch
        else:
            tb = min(batch, max(128, (tile_batch // 128) * 128))
    else:
        tb = _pick_batch_tile(batch, d_pad, x_itemsize, vmem_cap)

    grid_n = pl.cdiv(batch, tb)
    padded = grid_n * tb                        # lane-dense output width (>= batch)

    w2d = jnp.asarray(weight).reshape(1, input_dim)
    b_smem = jnp.asarray(bias, jnp.float32).reshape(1)

    cost = pl.CostEstimate(
        flops=2 * batch * input_dim,
        transcendentals=0,
        bytes_accessed=batch * input_dim * x_itemsize
        + input_dim * jnp.dtype(w2d.dtype).itemsize
        + batch * 4 + 4,
    )

    out_row = pl.pallas_call(
        _linear_kernel,
        out_shape=jax.ShapeDtypeStruct((1, padded), jnp.float32),
        grid=(grid_n,),
        in_specs=[
            pl.BlockSpec((tb, input_dim), lambda i: (i, 0)),     # streamed x tiles
            pl.BlockSpec((1, input_dim), lambda i: (0, 0)),      # weight, VMEM-resident
            pl.BlockSpec(memory_space=pltpu.MemorySpace.SMEM),   # bias scalar in SMEM
        ],
        out_specs=pl.BlockSpec((1, tb), lambda i: (0, i)),       # lane-dense out row
        compiler_params=pltpu.CompilerParams(
            dimension_semantics=("parallel",),                   # v7x megacore sharding
            vmem_limit_bytes=_vmem_limit_bytes(tb, d_pad, x_itemsize, vmem_cap),
        ),
        cost_estimate=cost,
    )(x, w2d, b_smem)

    # Padded tail columns (ragged last tile) are sliced away here.
    return out_row[0, :batch].reshape(batch, 1)


def get_feature_importance(weight):
    """Equivalent of SimpleClassifier.get_feature_importance(): the learned weights."""
    return jnp.asarray(weight).reshape(-1)


def init_params(input_dim, key):
    """Deterministic init matching nn.Linear's default U(-1/sqrt(D), 1/sqrt(D))."""
    kw, kb = jax.random.split(key)
    bound = 1.0 / jnp.sqrt(jnp.float32(input_dim))
    weight = jax.random.uniform(kw, (1, input_dim), jnp.float32, -bound, bound)
    bias = jax.random.uniform(kb, (1,), jnp.float32, -bound, bound)
    return weight, bias


if __name__ == "__main__":
    key = jax.random.PRNGKey(0)
    k_x, k_p, k_x2 = jax.random.split(key, 3)

    # Test 1: small shape, single full-extent step.
    batch, input_dim = 8, 32
    x = jax.random.normal(k_x, (batch, input_dim), jnp.float32)
    weight, bias = init_params(input_dim, k_p)
    out = simple_classifier_forward(x, weight, bias)
    jax.block_until_ready(out)
    ref = x @ weight.T + bias
    assert out.shape == (batch, 1)
    assert jnp.allclose(out, ref, atol=1e-5, rtol=1e-5)

    # Test 2: tiled path, 3 batch tiles of 128 with a ragged tail.
    batch2, input_dim2 = 300, 64
    x2 = jax.random.normal(k_x2, (batch2, input_dim2), jnp.float32)
    w2, b2 = init_params(input_dim2, jax.random.PRNGKey(1))
    out2 = simple_classifier_forward(x2, w2, b2, tile_batch=128)
    jax.block_until_ready(out2)
    ref2 = x2 @ w2.T + b2
    assert out2.shape == (batch2, 1)
    assert jnp.allclose(out2, ref2, atol=1e-4, rtol=1e-4)

    # Test 3: native bf16 streaming with auto tiling (>= 2 grid steps).
    x3 = x2.astype(jnp.bfloat16)
    out3 = simple_classifier_forward(x3, w2, b2)
    jax.block_until_ready(out3)
    ref3 = x3.astype(jnp.float32) @ w2.T + b2
    assert out3.shape == (batch2, 1)
    assert jnp.allclose(out3, ref3, atol=5e-3, rtol=5e-3)

    print("KERNEL_OK")
</pallas_src>

<mosaic_0001>
module attributes {stable_mosaic.version = 11 : i64} {
  func.func @_linear_kernel(%arg0: i32, %arg1: memref<8x32xf32, #tpu.memory_space<vmem>>, %arg2: memref<1x32xf32, #tpu.memory_space<vmem>>, %arg3: memref<1xf32, #tpu.memory_space<smem>>, %arg4: memref<1x8xf32, #tpu.memory_space<vmem>>) attributes {dimension_semantics = [#tpu.dimension_semantics<parallel>], iteration_bounds = array<i64: 1>, scalar_prefetch = 0 : i64, scratch_operands = 0 : i64, tpu.core_type = #tpu.core_type<tc>, window_params = [{transform_indices = @transform_0, window_bounds = array<i64: 8, 32>}, {pipeline_mode = #tpu.pipeline_mode<synchronous>, transform_indices = @transform_1, window_bounds = array<i64: 1, 32>}, {transform_indices = @transform_2, window_bounds = array<i64: 1>}, {transform_indices = @transform_3, window_bounds = array<i64: 1, 8>}]} {
    %c0 = arith.constant 0 : index
    %c0_0 = arith.constant 0 : index
    %0 = vector.load %arg1[%c0, %c0_0] : memref<8x32xf32, #tpu.memory_space<vmem>>, vector<8x32xf32>
    %c0_1 = arith.constant 0 : index
    %c0_2 = arith.constant 0 : index
    %1 = vector.load %arg2[%c0_1, %c0_2] : memref<1x32xf32, #tpu.memory_space<vmem>>, vector<1x32xf32>
    %2 = vector.broadcast %1 : vector<1x32xf32> to vector<8x32xf32>
    %3 = arith.mulf %0, %2 : vector<8x32xf32>
    %cst = arith.constant dense<0.000000e+00> : vector<8xf32>
    %4 = vector.multi_reduction <add>, %3, %cst [1] : vector<8x32xf32> to vector<8xf32>
    %5 = vector.shape_cast %4 : vector<8xf32> to vector<8x1xf32>
    %6 = tpu.transpose %5, [1, 0] : vector<8x1xf32> -> vector<1x8xf32>
    %c0_3 = arith.constant 0 : index
    %7 = memref.load %arg3[%c0_3] : memref<1xf32, #tpu.memory_space<smem>>
    %8 = vector.broadcast %7 : f32 to vector<1x8xf32>
    %9 = arith.addf %6, %8 : vector<1x8xf32>
    %c0_4 = arith.constant 0 : index
    %c0_5 = arith.constant 0 : index
    %10 = vector.load %arg4[%c0_4, %c0_5] : memref<1x8xf32, #tpu.memory_space<vmem>>, vector<1x8xf32>
    tpu.vector_store %arg4[%c0_4, %c0_5], %9 {strides = array<i32>} : memref<1x8xf32, #tpu.memory_space<vmem>>, vector<1x8xf32>,
    return
  }
  func.func @transform_0(%arg0: i32) -> (i32, i32) {
    %c0_i32 = arith.constant 0 : i32
    %c0_i32_0 = arith.constant 0 : i32
    return %arg0, %c0_i32 : i32, i32
  }
  func.func @transform_1(%arg0: i32) -> (i32, i32) {
    %c0_i32 = arith.constant 0 : i32
    %c0_i32_0 = arith.constant 0 : i32
    %c0_i32_1 = arith.constant 0 : i32
    return %c0_i32, %c0_i32_0 : i32, i32
  }
  func.func @transform_2(%arg0: i32) -> i32 {
    %c0_i32 = arith.constant 0 : i32
    %c0_i32_0 = arith.constant 0 : i32
    return %c0_i32 : i32
  }
  func.func @transform_3(%arg0: i32) -> (i32, i32) {
    %c0_i32 = arith.constant 0 : i32
    %c0_i32_0 = arith.constant 0 : i32
    return %c0_i32, %arg0 : i32, i32
  }
}

</mosaic_0001>

<bundles_post_ra>
// kernel: tpu_custom_call.1
= control target key start
LH: loop header
LB: loop body
LE: loop exit
PB: predicated region body
PF: predicated region fallthrough
CT: control target
= control target key end

     0   :  { %9 = vsyncpa [#allocation4], 0  ;;  %s197_s0 = inlined_call_operand.hbm [shape: f32[8,32], index: 0, kind: input, shape index: {}]   ;;  %s198_s1 = inlined_call_operand.vmem [shape: f32[1,32], index: 1, kind: input, shape index: {}]   ;;  %s199_s2 = inlined_call_operand.<no memory space> [shape: f32[1], index: 2, kind: input, shape index: {}]   ;;  %s200_s3 = inlined_call_operand.hbm [shape: f32[1,8], index: 3, kind: output, shape index: {}]  }
   0x1   :  { %10 = vsyncpa [#allocation5], 0  ;;  %s145_s12 = smov [#allocation3]   ;;  %s97_s16 = scalar_lea.hbm %s197_s0, 128 }
   0x2   :  { %s17_s13 = sshll.u32 %s145_s12, 4  ;;  %p98_p0 = scmp.ne.s32.totalorder %s197_s0, %s97_s16  ;;  %s18_s13 = int_to_ptr.vmem [resolvable:$true] %s17_s13 }
   0x3   :  { %p101_p1 = scmp.lt.u32.totalorder %s97_s16, %s197_s0 }
   0x5   :  { %p103_p2 = pnand %p101_p1, %p98_p0 }
   0x7   :  { %106 = shalt.err (!%p103_p2)
}
   0x8   :  { %s107_s21 = scalar_lea.vmem %s18_s13, 128  ;;  %p112_p4 = scmp.lt.s32.totalorder %s18_s13, %s18_s13 }
   0x9   :  { %p108_p3 = scmp.ne.s32.totalorder %s18_s13, %s107_s21  ;;  %p113_p5 = scmp.lt.s32.totalorder %s107_s21, %s107_s21 }
   0xb   :  { %p114_p6 = por %p113_p5, %p112_p4 }
   0xd   :  { %p115_p7 = pnand %p114_p6, %p108_p3 }
   0xf   :  { %118 = shalt.err (!%p115_p7)
}
  0x10   :  { %20 = dma.hbm_to_vmem [thread:$0]  %s197_s0, 128, %s18_s13, [#allocation4]  }
  0x11   :  { %141 = dma.done.wait [#allocation4], 128  }
  0x12   :  { %142 = vsyncadd [#allocation4], 4294967168  ;;  %v28_v0 = vld [vmem:[#allocation3] sm:$0xff]  ;;  %vm37_vm0 = vcmask 261120   ;;  %v74_v5 = vstv %s199_s2  ;;  %s146_s28 = smov [#allocation6]   ;;  %vm76_vm1 = vcmask 57344  }
  0x13   :  { %v93_v1 = vld [vmem:[%s198_s1] ss:$0 sm:$0xff]  ;;  %s84_s29 = sshll.u32 %s146_s28, 4  ;;  %s85_s29 = int_to_ptr.vmem [resolvable:$true] %s84_s29 }
  0x14   :  { %v36_v2 = vmul.f32 %v93_v1, %v28_v0  ;;  %s119_s0 = scalar_lea.vmem %s85_s29, 16  ;;  %s123_s1 = scalar_lea.vmem %s85_s29, 32 }
  0x15   :  { %p120_p8 = scmp.ne.s32.totalorder %s85_s29, %s119_s0  ;;  %p124_p9 = scmp.lt.s32.totalorder %s85_s29, %s85_s29 }
  0x16   :  { %v38_v3 = vsel %vm37_vm0, %v36_v2, 0.0  ;;  %p125_p10 = scmp.lt.s32.totalorder %s123_s1, %s119_s0 }
  0x17   :  { %39 = vadd.xlane.f32.xlu0 %v38_v3 }
  0x18   :  { %p126_p11 = por %p125_p10, %p124_p9 }
  0x1a   :  { %p127_p12 = pnand %p126_p11, %p120_p8 }
  0xa4   :  { %v40_v4 = vpop.xlane.xlu0 %39 }
  0xa5   :  { %41 = vxpose.xlu0.b32.start.end [1/1] (short) (narrow) %v40_v4, 8 }
 0x125   :  { %v57_v6 = vpop.trf.xlu0 }
 0x126   :  { %v75_v7 = vadd.f32 %v74_v5, %v57_v6 }
 0x128   :  { %77 = vst.msk [vmem:[#allocation6] sm:$0x1] %vm76_vm1, %v75_v7 }
 0x129   :  { %130 = shalt.err (!%p127_p12)
}
 0x12a   :  { %s131_s5 = scalar_lea.hbm %s200_s3, 16 }
 0x12b   :  { %p132_p13 = scmp.ne.s32.totalorder %s200_s3, %s131_s5  ;;  %p135_p0 = scmp.lt.u32.totalorder %s131_s5, %s200_s3 }
 0x12d   :  { %p137_p1 = pnand %p135_p0, %p132_p13 }
 0x12f   :  { %140 = shalt.err (!%p137_p1)
}
 0x130   :  { %87 = dma.vmem_to_hbm [thread:$0]  %s85_s29, 16, %s200_s3, [#allocation5]  }
 0x131   :  { %143 = dma.done.wait [#allocation5], 16  }
 0x132   :  { %144 = vsyncadd [#allocation5], 4294967280 }
 0x133   :  { %91 = vsyncpa [#allocation4], 1 }
 0x134   :  { %92 = vsyncpa [#allocation5], 1 }

</bundles_post_ra>
